<compile_context>
chip_gen: v5e
topology: v5e:2x2
jax: 0.10.0
libtpu: 0.0.40
codegen_flags: <defaults>
</compile_context>

<pallas_src>
import jax
import jax.numpy as jnp
from jax.experimental import pallas as pl
from jax.experimental.pallas import tpu as pltpu


def _round_up(a, b):
    return ((a + b - 1) // b) * b


def _round_down(a, b):
    return (a // b) * b


def conv1x1_kernel_bfold(x_ref, w_ref, b_ref, o_ref):
    # x_ref: (B, Cin, t_hw)   whole-batch activation tile (lane-dense on HW)
    # w_ref: (Cout, Cin)      resident weight
    # b_ref: (Cout, 1)        resident bias column (broadcast over lanes)
    # o_ref: (B, Cout, t_hw)  lane-dense output tile
    w = w_ref[...]
    bias = b_ref[...]
    # B is small here by construction (block capped at ~2 MiB) -> static unroll.
    for b in range(x_ref.shape[0]):
        acc = jnp.dot(w, x_ref[b], preferred_element_type=jnp.float32)
        o_ref[b] = (acc + bias).astype(o_ref.dtype)


def conv1x1_kernel(x_ref, w_ref, b_ref, o_ref):
    # Per-batch-element variant for large B*Cin*t_hw blocks.
    # x_ref: (1, Cin, t_hw), o_ref: (1, Cout, t_hw)
    acc = jnp.dot(w_ref[...], x_ref[0], preferred_element_type=jnp.float32)
    o_ref[0] = (acc + b_ref[...]).astype(o_ref.dtype)


def predict_forward(x, weight, bias, *, max_t_hw=2048):
    """Equivalent of Predict.forward (1x1 Conv2d), NCHW in / NCHW out.

    x:      (B, Cin, H, W)  float32
    weight: (Cout, Cin, 1, 1)
    bias:   (Cout,)
    returns (B, Cout, H, W)
    """
    B, Cin, H, W = x.shape
    Cout = weight.shape[0]
    HW = H * W
    LANE = 128

    # ---- tile sizing (pad bounded to <128 lanes per tile boundary) ----
    HW_lane = _round_up(HW, LANE)
    per_buf_cap = 4 << 20                                   # ~4 MiB per input buffer
    t_cap = max(LANE, _round_down(per_buf_cap // (4 * Cin), LANE))
    max_tile = max(LANE, min(max_t_hw, t_cap))
    n_tiles = pl.cdiv(HW_lane, max_tile)
    t_hw = _round_up(pl.cdiv(HW_lane, n_tiles), LANE)
    HW_pad = n_tiles * t_hw

    x3 = x.reshape(B, Cin, HW)
    if HW_pad != HW:
        # Only reachable when HW is not lane-aligned; pad is now < 128*n_tiles.
        # TODO(synk): replace with an in-kernel masked store on the last tile.
        x3 = jnp.pad(x3, ((0, 0), (0, 0), (0, HW_pad - HW)))

    w_mat = weight.reshape(Cout, Cin)      # (Cout, Cin)
    b_col = bias.reshape(Cout, 1)          # (Cout, 1) -> lane broadcast in-kernel

    ce = pl.CostEstimate(
        flops=2 * B * Cout * Cin * HW_pad,
        transcendentals=0,
        bytes_accessed=(B * Cin * HW_pad + Cout * Cin + Cout
                        + B * Cout * HW_pad) * 4)

    # Deeper input pipelining only pays when there are several HW tiles.
    x_pipe = {"pipeline_mode": pl.Buffered(3)} if n_tiles >= 3 else {}

    # Fold the batch axis into the block when the whole-batch tile is small.
    fold_b = (B * Cin * t_hw * 4) <= (2 << 20)

    if fold_b:
        grid = (n_tiles,)
        kernel = conv1x1_kernel_bfold
        in_specs = [
            pl.BlockSpec((B, Cin, t_hw), lambda j: (0, 0, j), **x_pipe),
            pl.BlockSpec((Cout, Cin), lambda j: (0, 0)),
            pl.BlockSpec((Cout, 1), lambda j: (0, 0)),
        ]
        out_specs = pl.BlockSpec((B, Cout, t_hw), lambda j: (0, 0, j))
        dims = ("parallel",)
    else:
        grid = (B, n_tiles)
        kernel = conv1x1_kernel
        in_specs = [
            pl.BlockSpec((1, Cin, t_hw), lambda b, j: (b, 0, j), **x_pipe),
            pl.BlockSpec((Cout, Cin), lambda b, j: (0, 0)),
            pl.BlockSpec((Cout, 1), lambda b, j: (0, 0)),
        ]
        out_specs = pl.BlockSpec((1, Cout, t_hw), lambda b, j: (b, 0, j))
        dims = ("parallel", "parallel")

    out = pl.pallas_call(
        kernel,
        out_shape=jax.ShapeDtypeStruct((B, Cout, HW_pad), x.dtype),
        grid_spec=pltpu.PrefetchScalarGridSpec(
            num_scalar_prefetch=0,
            grid=grid,
            in_specs=in_specs,
            out_specs=out_specs,
        ),
        compiler_params=pltpu.CompilerParams(dimension_semantics=dims),
        cost_estimate=ce,
    )(x3, w_mat, b_col)

    if HW_pad != HW:
        out = out[:, :, :HW]
    return out.reshape(B, Cout, H, W)


if __name__ == "__main__":
    key = jax.random.PRNGKey(0)
    k_x, k_w, k_b = jax.random.split(key, 3)

    B, Cin, H, W = 2, 32, 16, 16          # in_planes=32 (module default)
    Cout, ks = 1, 1                       # out_planes=1, kernel_size=1

    x = jax.random.normal(k_x, (B, Cin, H, W), dtype=jnp.float32)

    # Deterministic parameter init (PyTorch Conv2d-like uniform bounds).
    fan_in = Cin * ks * ks
    bound = 1.0 / (fan_in ** 0.5)
    weight = jax.random.uniform(k_w, (Cout, Cin, ks, ks),
                                minval=-bound, maxval=bound,
                                dtype=jnp.float32)
    bias = jax.random.uniform(k_b, (Cout,), minval=-bound, maxval=bound,
                              dtype=jnp.float32)

    y = predict_forward(x, weight, bias)
    y = jax.block_until_ready(y)

    # Reference check (plain JAX einsum == 1x1 conv).
    y_ref = jnp.einsum("bchw,oc->bohw", x, weight.reshape(Cout, Cin)) \
        + bias.reshape(1, Cout, 1, 1)
    assert y.shape == (B, Cout, H, W)
    assert jnp.allclose(y, y_ref, atol=1e-5, rtol=1e-5)

    print("KERNEL_OK")
</pallas_src>

<mosaic_0001>
module attributes {stable_mosaic.version = 11 : i64} {
  func.func @conv1x1_kernel_bfold(%arg0: i32, %arg1: memref<2x32x256xf32, #tpu.memory_space<vmem>>, %arg2: memref<1x32xf32, #tpu.memory_space<vmem>>, %arg3: memref<1x1xf32, #tpu.memory_space<vmem>>, %arg4: memref<2x1x256xf32, #tpu.memory_space<vmem>>) attributes {dimension_semantics = [#tpu.dimension_semantics<parallel>], iteration_bounds = array<i64: 1>, scalar_prefetch = 0 : i64, scratch_operands = 0 : i64, tpu.core_type = #tpu.core_type<tc>, window_params = [{transform_indices = @transform_0, window_bounds = array<i64: 2, 32, 256>}, {pipeline_mode = #tpu.pipeline_mode<synchronous>, transform_indices = @transform_1, window_bounds = array<i64: 1, 32>}, {pipeline_mode = #tpu.pipeline_mode<synchronous>, transform_indices = @transform_2, window_bounds = array<i64: 1, 1>}, {transform_indices = @transform_3, window_bounds = array<i64: 2, 1, 256>}]} {
    %c0 = arith.constant 0 : index
    %c0_0 = arith.constant 0 : index
    %0 = vector.load %arg2[%c0, %c0_0] : memref<1x32xf32, #tpu.memory_space<vmem>>, vector<1x32xf32>
    %c0_1 = arith.constant 0 : index
    %c0_2 = arith.constant 0 : index
    %1 = vector.load %arg3[%c0_1, %c0_2] : memref<1x1xf32, #tpu.memory_space<vmem>>, vector<1x1xf32>
    %c0_3 = arith.constant 0 : index
    %c0_4 = arith.constant 0 : index
    %c0_5 = arith.constant 0 : index
    %2 = vector.load %arg1[%c0_3, %c0_4, %c0_5] : memref<2x32x256xf32, #tpu.memory_space<vmem>>, vector<1x32x256xf32>
    %3 = vector.shape_cast %2 : vector<1x32x256xf32> to vector<32x256xf32>
    %cst = arith.constant dense<0.000000e+00> : vector<1x256xf32>
    %4 = tpu.matmul %0, %3, %cst {dimension_numbers = #tpu.dot_dimension_numbers<[1], [0], [0], [1], [0, 0, 1, 1], [], []>} : vector<1x32xf32>, vector<32x256xf32>, vector<1x256xf32> -> vector<1x256xf32>
    %5 = vector.broadcast %1 : vector<1x1xf32> to vector<1x256xf32>
    %6 = arith.addf %4, %5 : vector<1x256xf32>
    %c0_6 = arith.constant 0 : index
    %c0_7 = arith.constant 0 : index
    %c0_8 = arith.constant 0 : index
    %7 = vector.load %arg4[%c0_6, %c0_7, %c0_8] : memref<2x1x256xf32, #tpu.memory_space<vmem>>, vector<1x1x256xf32>
    %8 = vector.shape_cast %7 : vector<1x1x256xf32> to vector<1x256xf32>
    %9 = vector.shape_cast %6 : vector<1x256xf32> to vector<1x1x256xf32>
    tpu.vector_store %arg4[%c0_6, %c0_7, %c0_8], %9 {strides = array<i32>} : memref<2x1x256xf32, #tpu.memory_space<vmem>>, vector<1x1x256xf32>,
    %c1 = arith.constant 1 : index
    %c0_9 = arith.constant 0 : index
    %c0_10 = arith.constant 0 : index
    %10 = vector.load %arg1[%c1, %c0_9, %c0_10] : memref<2x32x256xf32, #tpu.memory_space<vmem>>, vector<1x32x256xf32>
    %11 = vector.shape_cast %10 : vector<1x32x256xf32> to vector<32x256xf32>
    %cst_11 = arith.constant dense<0.000000e+00> : vector<1x256xf32>
    %12 = tpu.matmul %0, %11, %cst_11 {dimension_numbers = #tpu.dot_dimension_numbers<[1], [0], [0], [1], [0, 0, 1, 1], [], []>} : vector<1x32xf32>, vector<32x256xf32>, vector<1x256xf32> -> vector<1x256xf32>
    %13 = vector.broadcast %1 : vector<1x1xf32> to vector<1x256xf32>
    %14 = arith.addf %12, %13 : vector<1x256xf32>
    %c1_12 = arith.constant 1 : index
    %c0_13 = arith.constant 0 : index
    %c0_14 = arith.constant 0 : index
    %15 = vector.load %arg4[%c1_12, %c0_13, %c0_14] : memref<2x1x256xf32, #tpu.memory_space<vmem>>, vector<1x1x256xf32>
    %16 = vector.shape_cast %15 : vector<1x1x256xf32> to vector<1x256xf32>
    %17 = vector.shape_cast %14 : vector<1x256xf32> to vector<1x1x256xf32>
    tpu.vector_store %arg4[%c1_12, %c0_13, %c0_14], %17 {strides = array<i32>} : memref<2x1x256xf32, #tpu.memory_space<vmem>>, vector<1x1x256xf32>,
    return
  }
  func.func @transform_0(%arg0: i32) -> (i32, i32, i32) {
    %c0_i32 = arith.constant 0 : i32
    %c0_i32_0 = arith.constant 0 : i32
    %c0_i32_1 = arith.constant 0 : i32
    return %c0_i32, %c0_i32_0, %arg0 : i32, i32, i32
  }
  func.func @transform_1(%arg0: i32) -> (i32, i32) {
    %c0_i32 = arith.constant 0 : i32
    %c0_i32_0 = arith.constant 0 : i32
    %c0_i32_1 = arith.constant 0 : i32
    return %c0_i32, %c0_i32_0 : i32, i32
  }
  func.func @transform_2(%arg0: i32) -> (i32, i32) {
    %c0_i32 = arith.constant 0 : i32
    %c0_i32_0 = arith.constant 0 : i32
    %c0_i32_1 = arith.constant 0 : i32
    return %c0_i32, %c0_i32_0 : i32, i32
  }
  func.func @transform_3(%arg0: i32) -> (i32, i32, i32) {
    %c0_i32 = arith.constant 0 : i32
    %c0_i32_0 = arith.constant 0 : i32
    %c0_i32_1 = arith.constant 0 : i32
    return %c0_i32, %c0_i32_0, %arg0 : i32, i32, i32
  }
}

</mosaic_0001>

<bundles_post_ra>
// kernel: tpu_custom_call.1
= control target key start
LH: loop header
LB: loop body
LE: loop exit
PB: predicated region body
PF: predicated region fallthrough
CT: control target
= control target key end

     0   :  { %s288_s0 = inlined_call_operand.hbm [shape: f32[2,32,256], index: 0, kind: input, shape index: {}]   ;;  %s289_s1 = inlined_call_operand.vmem [shape: f32[1,32], index: 1, kind: input, shape index: {}]   ;;  %s290_s2 = inlined_call_operand.<no memory space> [shape: f32[1,1], index: 2, kind: input, shape index: {}]   ;;  %s291_s3 = inlined_call_operand.hbm [shape: f32[2,1,256], index: 3, kind: output, shape index: {}]  }
   0x1   :  { %v8_v0 = vstv %s290_s2 }
   0x2   :  { %9 = vst [vmem:[#allocation2] sm:$0x1] %v8_v0 }
   0x3   :  { %10 = vsyncpa [#allocation4], 0 }
   0x4   :  { %11 = vsyncpa [#allocation5], 0  ;;  %s16_s16 = sshll.u32 %s288_s0, 4  ;;  %s243_s17 = smov [#allocation3]   ;;  %s17_s16 = int_to_ptr.hbm [resolvable:$true] %s16_s16 }
   0x5   :  { %s18_s18 = sshll.u32 %s243_s17, 4  ;;  %s244_s19 = smov 256   ;;  %s19_s18 = int_to_ptr.vmem [resolvable:$true] %s18_s18 }
   0x6   :  { %s245_s20 = smov 16  }
   0x7   :  { %24 = dma.hbm_to_vmem [thread:$0]  %s17_s16, 2048, %s19_s18, [#allocation4], %s244_s19, %s244_s19, %s245_s20  }
   0x8   :  { %239 = dma.done.wait [#allocation4], 2048  }
   0x9   :  { %240 = vsyncadd [#allocation4], 4294965248  ;;  %v246_v1 = vmov 0   ;;  %v111_v2 = vld [vmem:[#allocation3 + $0x70] sm:$0xff]  ;;  %v112_v3 = vld [vmem:[#allocation3 + $0x78] sm:$0xff]  ;;  %vm49_vm0 = vcmask 261120   ;;  %v99_v22 = vlaneseq }
   0xa   :  { %190 = vset.pattern.permute.xlu0 %v246_v1  ;;  %v109_v4 = vld [vmem:[#allocation3 + $0x60] sm:$0xff]  ;;  %125 = vmatpush.msra.mxu2 %v111_v2  ;;  %v110_v5 = vld [vmem:[#allocation3 + $0x68] sm:$0xff]  ;;  %v42_v6 = vld [vmem:[#allocation3 + $0x38] sm:$0xff]  ;;  %vm96_vm1 = vcmask 1040384   ;;  %s166_s24 = sshll.u32 %s291_s3, 4  ;;  %s248_s25 = smov 32   ;;  %s167_s24 = int_to_ptr.hbm [resolvable:$true] %s166_s24 }
   0xb   :  { %145 = vmatpush.msra.mxu3 %v112_v3  ;;  %v107_v7 = vld [vmem:[#allocation3 + $0x50] sm:$0xff]  ;;  %85 = vmatpush.msra.mxu1 %v42_v6  ;;  %v108_v8 = vld [vmem:[#allocation3 + $0x58] sm:$0xff]  ;;  %v40_v10 = vld [vmem:[#allocation3 + $0x28] sm:$0xff]  ;;  %vm101_vm2 = vcmp.lt.s32.totalorder %v99_v22, 256  ;;  %s249_s26 = smov 2  }
   0xc   :  { %v41_v9 = vld [vmem:[#allocation3 + $0x30] sm:$0xff]  ;;  %126 = vmatpush.msra.mxu2 %v109_v4  ;;  %v105_v11 = vld [vmem:[#allocation3 + $0x40] sm:$0xff]  ;;  %v106_v12 = vld [vmem:[#allocation3 + $0x48] sm:$0xff] }
   0xd   :  { %146 = vmatpush.msra.mxu3 %v110_v5  ;;  %65 = vmatpush.msra.mxu0 %v41_v9  ;;  %v39_v13 = vld [vmem:[#allocation3 + $0x20] sm:$0xff]  ;;  %v38_v14 = vld [vmem:[#allocation3 + $0x18] sm:$0xff]  ;;  %v37_v16 = vld [vmem:[#allocation3 + $0x10] sm:$0xff] }
   0xe   :  { %86 = vmatpush.msra.mxu1 %v40_v10  ;;  %127 = vmatpush.msra.mxu2 %v107_v7  ;;  %v33_v15 = vld [vmem:[%s289_s1] sm:$0x1]  ;;  %v36_v17 = vld [vmem:[#allocation3 + $0x8] sm:$0xff]  ;;  %v35_v19 = vld [vmem:[#allocation3] sm:$0xff]  ;;  %s247_s1 = smov [#allocation6]  }
   0xf   :  { %147 = vmatpush.msra.mxu3 %v108_v8  ;;  %66 = vmatpush.msra.mxu0 %v39_v13  ;;  %v34_v18 = vld [vmem:[#allocation2] sm:$0x1]  ;;  %s164_s21 = sshll.u32 %s247_s1, 4  ;;  %s165_s21 = int_to_ptr.vmem [resolvable:$true] %s164_s21 }
  0x10   :  { %87 = vmatpush.msra.mxu1 %v38_v14  ;;  %128 = vmatpush.msra.mxu2 %v105_v11 }
  0x11   :  { %148 = vmatpush.msra.mxu3 %v106_v12  ;;  %181 = vmatmul.msk.f32.vlgmr.msra.gmra.mxu2 %vm49_vm0, %v33_v15 }
  0x12   :  { %182 = vmatmul.msk.f32.vlgmr.msra.gmra.mxu3 %vm49_vm0, %v33_v15  ;;  %67 = vmatpush.msra.mxu0 %v37_v16 }
  0x13   :  { %88 = vmatpush.msra.mxu1 %v36_v17  ;;  %45 = vperm.xlu0 %190, %v34_v18  }
  0x14   :  { %180 = vmatmul.msk.f32.vlgmr.msra.gmra.mxu1 %vm49_vm0, %v33_v15  ;;  %68 = vmatpush.msra.mxu0 %v35_v19 }
  0x15   :  { %179 = vmatmul.msk.f32.vlgmr.msra.gmra.mxu0 %vm49_vm0, %v33_v15 }
  0x85   :  { %v46_v20 = vpop.permute.xlu0 %45 }
  0x86   :  { %v48_v21 = vperm.slane %v46_v20, 0 }
  0x91   :  { %v90_v23 = vpop.f32.mrf.mxu1 }
  0x92   :  { %v91_v24 = vadd.f32 %v90_v23, %v48_v21  ;;  %v70_v25 = vpop.f32.mrf.mxu0 }
  0x93   :  { %v71_v27 = vadd.f32 %v70_v25, %v48_v21 }
  0x94   :  { %v95_v26 = vrot.slane %v91_v24, 7  ;;  %v130_v28 = vpop.f32.mrf.mxu2 }
  0x95   :  { %v150_v29 = vpop.f32.mrf.mxu3  ;;  %v131_v32 = vadd.f32 %v130_v28, %v48_v21 }
  0x96   :  { %v97_v30 = vsel %vm96_vm1, %v71_v27, %v95_v26  ;;  %v151_v31 = vadd.f32 %v150_v29, %v48_v21 }
  0x97   :  { %103 = vst.msk [vmem:[#allocation6] sm:$0x3] %vm101_vm2, %v97_v30 }
  0x98   :  { %v155_v33 = vrot.slane %v151_v31, 7 }
  0x9a   :  { %v156_v34 = vsel %vm96_vm1, %v131_v32, %v155_v33 }
  0x9b   :  { %159 = vst.msk [vmem:[#allocation6 + $0x2] sm:$0x3] %vm101_vm2, %v156_v34 }
  0x9c   :  { %172 = dma.vmem_to_hbm [thread:$0]  %s165_s21, 64, %s167_s24, [#allocation5], %s248_s25, %s248_s25, %s249_s26  }
  0x9d   :  { %241 = dma.done.wait [#allocation5], 64  }
  0x9e   :  { %242 = vsyncadd [#allocation5], 4294967232 }
  0x9f   :  { %177 = vsyncpa [#allocation4], 1 }
  0xa0   :  { %178 = vsyncpa [#allocation5], 1 }

</bundles_post_ra>
